<compile_context>
chip_gen: v7x
topology: tpu7x:2x2x1
jax: 0.10.0
libtpu: 0.0.40
codegen_flags: <defaults>
</compile_context>

<pallas_src>
import functools

import jax
import jax.numpy as jnp
from jax.experimental import pallas as pl
from jax.experimental.pallas import tpu as pltpu


def _round_up(n, m):
    return ((n + m - 1) // m) * m


def _linear2out_kernel(x_ref, wf_ref, bf_ref, wreg_ref, breg_ref,
                       oc_ref, or_ref, *, c_pad):
    x = x_ref[...]

    # One fused MXU pass for both x-projections:
    #   lanes [0, c_pad)          -> classification head
    #   lanes [c_pad, c_pad+h_pad) -> hidden pre-activation
    z = jnp.dot(x, wf_ref[...], preferred_element_type=jnp.float32) + bf_ref[...]

    # Class head: lane-tile-aligned slice, unmasked 128-lane store.
    oc_ref[...] = z[:, :c_pad].astype(oc_ref.dtype)

    # Regression head: relu(h) @ Wreg + breg, K = 512 (clean multiple of 128).
    h = jnp.maximum(z[:, c_pad:], 0.0)
    orr = jnp.dot(h, wreg_ref[...], preferred_element_type=jnp.float32) + breg_ref[...]
    or_ref[...] = orr.astype(or_ref.dtype)


def linear2out(x, wc_t, bc, win_t, bin_, wreg_t, breg, *, max_tile_rows=256):
    """x: (B, F). wc_t: (F, C). win_t: (F, H). wreg_t: (H, R). biases: (1, out) or (out,)."""
    B, F = x.shape
    C = wc_t.shape[1]
    H = win_t.shape[1]
    R = wreg_t.shape[1]
    dtype = x.dtype

    LANE = 128
    c_pad = _round_up(max(C, LANE), LANE)   # 10  -> 128
    h_pad = _round_up(max(H, LANE), LANE)   # 500 -> 512
    r_pad = _round_up(max(R, LANE), LANE)   # 4   -> 128

    # --- Fused, zero-padded parameters (zeros guarantee no ReLU leakage). ---
    wf = jnp.zeros((F, c_pad + h_pad), dtype)
    wf = wf.at[:, :C].set(wc_t).at[:, c_pad:c_pad + H].set(win_t)
    bf = jnp.zeros((1, c_pad + h_pad), dtype)
    bf = bf.at[:, :C].set(jnp.reshape(bc, (1, C)))
    bf = bf.at[:, c_pad:c_pad + H].set(jnp.reshape(bin_, (1, H)))
    wreg_p = jnp.zeros((h_pad, r_pad), dtype).at[:H, :R].set(wreg_t)
    breg_p = jnp.zeros((1, r_pad), dtype).at[:, :R].set(jnp.reshape(breg, (1, R)))

    # --- Batch tiling: weights stay VMEM-resident, x/outputs stream per tile. ---
    b8 = _round_up(B, 8)
    tb = min(b8, max_tile_rows)
    b_pad = _round_up(b8, tb)
    x_p = x if b_pad == B else jnp.zeros((b_pad, F), dtype).at[:B].set(x)
    n_tiles = b_pad // tb

    kernel = functools.partial(_linear2out_kernel, c_pad=c_pad)

    oc_p, or_p = pl.pallas_call(
        kernel,
        out_shape=(
            jax.ShapeDtypeStruct((b_pad, c_pad), dtype),
            jax.ShapeDtypeStruct((b_pad, r_pad), dtype),
        ),
        grid_spec=pltpu.PrefetchScalarGridSpec(
            num_scalar_prefetch=0,
            grid=(n_tiles,),
            in_specs=[
                pl.BlockSpec((tb, F), lambda i: (i, 0)),                  # x tile
                pl.BlockSpec((F, c_pad + h_pad), lambda i: (0, 0)),       # fused W (resident)
                pl.BlockSpec((1, c_pad + h_pad), lambda i: (0, 0)),       # fused bias
                pl.BlockSpec((h_pad, r_pad), lambda i: (0, 0)),           # Wreg (resident)
                pl.BlockSpec((1, r_pad), lambda i: (0, 0)),               # breg
            ],
            out_specs=[
                pl.BlockSpec((tb, c_pad), lambda i: (i, 0)),
                pl.BlockSpec((tb, r_pad), lambda i: (i, 0)),
            ],
        ),
        compiler_params=pltpu.CompilerParams(
            dimension_semantics=("parallel",),        # v7x: 2 TCs split the batch axis
            vmem_limit_bytes=32 * 1024 * 1024,        # fits easily; safe on v7x's 64 MiB
        ),
    )(x_p, wf, bf, wreg_p, breg_p)

    # Strip lane/batch padding in the wrapper.
    return oc_p[:B, :C], or_p[:B, :R]


def init_linear_params(key, in_features, out_features, dtype=jnp.float32):
    """Deterministic init mimicking nn.Linear default (uniform +/- 1/sqrt(in))."""
    kw, kb = jax.random.split(key)
    bound = 1.0 / (in_features ** 0.5)
    # Store already transposed: (in_features, out_features)
    w_t = jax.random.uniform(kw, (in_features, out_features), dtype,
                             minval=-bound, maxval=bound)
    b = jax.random.uniform(kb, (1, out_features), dtype,
                           minval=-bound, maxval=bound)
    return w_t, b


if __name__ == "__main__":
    # Small shapes consistent with the module's forward: (batch, in_features)
    batch = 8
    in_features = 32
    num_out_class = 10
    num_out_reg = 4
    hidden = 500  # fixed by the module definition (nn.Linear(in_features, 500))

    key = jax.random.PRNGKey(0)
    kx, kc, kin, kreg = jax.random.split(key, 4)

    x = jax.random.normal(kx, (batch, in_features), jnp.float32)

    wc_t, bc = init_linear_params(kc, in_features, num_out_class)
    win_t, bin_ = init_linear_params(kin, in_features, hidden)
    wreg_t, breg = init_linear_params(kreg, hidden, num_out_reg)

    out_class, out_reg = jax.jit(linear2out)(x, wc_t, bc, win_t, bin_, wreg_t, breg)
    jax.block_until_ready((out_class, out_reg))

    # Pure-JAX reference check (silent on success).
    ref_class = x @ wc_t + bc
    ref_reg = jnp.maximum(x @ win_t + bin_, 0.0) @ wreg_t + breg
    assert out_class.shape == (batch, num_out_class)
    assert out_reg.shape == (batch, num_out_reg)
    assert jnp.allclose(out_class, ref_class, atol=1e-5, rtol=1e-5)
    assert jnp.allclose(out_reg, ref_reg, atol=1e-4, rtol=1e-4)

    print("KERNEL_OK")
</pallas_src>

<mosaic_0001>
module attributes {stable_mosaic.version = 11 : i64} {
  func.func @_linear2out_kernel(%arg0: i32, %arg1: memref<8x32xf32, #tpu.memory_space<vmem>>, %arg2: memref<32x640xf32, #tpu.memory_space<vmem>>, %arg3: memref<1x640xf32, #tpu.memory_space<vmem>>, %arg4: memref<512x128xf32, #tpu.memory_space<vmem>>, %arg5: memref<1x128xf32, #tpu.memory_space<vmem>>, %arg6: memref<8x128xf32, #tpu.memory_space<vmem>>, %arg7: memref<8x128xf32, #tpu.memory_space<vmem>>) attributes {dimension_semantics = [#tpu.dimension_semantics<parallel>], iteration_bounds = array<i64: 1>, scalar_prefetch = 0 : i64, scratch_operands = 0 : i64, tpu.core_type = #tpu.core_type<tc>, window_params = [{transform_indices = @transform_0, window_bounds = array<i64: 8, 32>}, {pipeline_mode = #tpu.pipeline_mode<synchronous>, transform_indices = @transform_1, window_bounds = array<i64: 32, 640>}, {pipeline_mode = #tpu.pipeline_mode<synchronous>, transform_indices = @transform_2, window_bounds = array<i64: 1, 640>}, {pipeline_mode = #tpu.pipeline_mode<synchronous>, transform_indices = @transform_3, window_bounds = array<i64: 512, 128>}, {pipeline_mode = #tpu.pipeline_mode<synchronous>, transform_indices = @transform_4, window_bounds = array<i64: 1, 128>}, {transform_indices = @transform_5, window_bounds = array<i64: 8, 128>}, {transform_indices = @transform_6, window_bounds = array<i64: 8, 128>}]} {
    %c0 = arith.constant 0 : index
    %c0_0 = arith.constant 0 : index
    %0 = vector.load %arg1[%c0, %c0_0] : memref<8x32xf32, #tpu.memory_space<vmem>>, vector<8x32xf32>
    %c0_1 = arith.constant 0 : index
    %c0_2 = arith.constant 0 : index
    %1 = vector.load %arg2[%c0_1, %c0_2] : memref<32x640xf32, #tpu.memory_space<vmem>>, vector<32x640xf32>
    %cst = arith.constant dense<0.000000e+00> : vector<8x640xf32>
    %2 = tpu.matmul %0, %1, %cst {dimension_numbers = #tpu.dot_dimension_numbers<[1], [0], [0], [1], [0, 0, 1, 1], [], []>} : vector<8x32xf32>, vector<32x640xf32>, vector<8x640xf32> -> vector<8x640xf32>
    %c0_3 = arith.constant 0 : index
    %c0_4 = arith.constant 0 : index
    %3 = vector.load %arg3[%c0_3, %c0_4] : memref<1x640xf32, #tpu.memory_space<vmem>>, vector<1x640xf32>
    %4 = vector.broadcast %3 : vector<1x640xf32> to vector<8x640xf32>
    %5 = arith.addf %2, %4 : vector<8x640xf32>
    %6 = vector.extract_strided_slice %5 {offsets = [0, 0], sizes = [8, 128], strides = [1, 1]} : vector<8x640xf32> to vector<8x128xf32>
    %c0_5 = arith.constant 0 : index
    %c0_6 = arith.constant 0 : index
    %7 = vector.load %arg6[%c0_5, %c0_6] : memref<8x128xf32, #tpu.memory_space<vmem>>, vector<8x128xf32>
    tpu.vector_store %arg6[%c0_5, %c0_6], %6 {strides = array<i32>} : memref<8x128xf32, #tpu.memory_space<vmem>>, vector<8x128xf32>,
    %8 = vector.extract_strided_slice %5 {offsets = [0, 128], sizes = [8, 512], strides = [1, 1]} : vector<8x640xf32> to vector<8x512xf32>
    %cst_7 = arith.constant 0.000000e+00 : f32
    %9 = vector.broadcast %cst_7 : f32 to vector<8x512xf32>
    %10 = arith.maximumf %8, %9 : vector<8x512xf32>
    %c0_8 = arith.constant 0 : index
    %c0_9 = arith.constant 0 : index
    %11 = vector.load %arg4[%c0_8, %c0_9] : memref<512x128xf32, #tpu.memory_space<vmem>>, vector<512x128xf32>
    %cst_10 = arith.constant dense<0.000000e+00> : vector<8x128xf32>
    %12 = tpu.matmul %10, %11, %cst_10 {dimension_numbers = #tpu.dot_dimension_numbers<[1], [0], [0], [1], [0, 0, 1, 1], [], []>} : vector<8x512xf32>, vector<512x128xf32>, vector<8x128xf32> -> vector<8x128xf32>
    %c0_11 = arith.constant 0 : index
    %c0_12 = arith.constant 0 : index
    %13 = vector.load %arg5[%c0_11, %c0_12] : memref<1x128xf32, #tpu.memory_space<vmem>>, vector<1x128xf32>
    %14 = vector.broadcast %13 : vector<1x128xf32> to vector<8x128xf32>
    %15 = arith.addf %12, %14 : vector<8x128xf32>
    %c0_13 = arith.constant 0 : index
    %c0_14 = arith.constant 0 : index
    %16 = vector.load %arg7[%c0_13, %c0_14] : memref<8x128xf32, #tpu.memory_space<vmem>>, vector<8x128xf32>
    tpu.vector_store %arg7[%c0_13, %c0_14], %15 {strides = array<i32>} : memref<8x128xf32, #tpu.memory_space<vmem>>, vector<8x128xf32>,
    return
  }
  func.func @transform_0(%arg0: i32) -> (i32, i32) {
    %c0_i32 = arith.constant 0 : i32
    %c0_i32_0 = arith.constant 0 : i32
    return %arg0, %c0_i32 : i32, i32
  }
  func.func @transform_1(%arg0: i32) -> (i32, i32) {
    %c0_i32 = arith.constant 0 : i32
    %c0_i32_0 = arith.constant 0 : i32
    %c0_i32_1 = arith.constant 0 : i32
    return %c0_i32, %c0_i32_0 : i32, i32
  }
  func.func @transform_2(%arg0: i32) -> (i32, i32) {
    %c0_i32 = arith.constant 0 : i32
    %c0_i32_0 = arith.constant 0 : i32
    %c0_i32_1 = arith.constant 0 : i32
    return %c0_i32, %c0_i32_0 : i32, i32
  }
  func.func @transform_3(%arg0: i32) -> (i32, i32) {
    %c0_i32 = arith.constant 0 : i32
    %c0_i32_0 = arith.constant 0 : i32
    %c0_i32_1 = arith.constant 0 : i32
    return %c0_i32, %c0_i32_0 : i32, i32
  }
  func.func @transform_4(%arg0: i32) -> (i32, i32) {
    %c0_i32 = arith.constant 0 : i32
    %c0_i32_0 = arith.constant 0 : i32
    %c0_i32_1 = arith.constant 0 : i32
    return %c0_i32, %c0_i32_0 : i32, i32
  }
  func.func @transform_5(%arg0: i32) -> (i32, i32) {
    %c0_i32 = arith.constant 0 : i32
    %c0_i32_0 = arith.constant 0 : i32
    return %arg0, %c0_i32 : i32, i32
  }
  func.func @transform_6(%arg0: i32) -> (i32, i32) {
    %c0_i32 = arith.constant 0 : i32
    %c0_i32_0 = arith.constant 0 : i32
    return %arg0, %c0_i32 : i32, i32
  }
}

</mosaic_0001>

<bundles_post_ra>
// kernel: linear2out.1
= control target key start
LH: loop header
LB: loop body
LE: loop exit
PB: predicated region body
PF: predicated region fallthrough
CT: control target
= control target key end

     0   :  { %v726_v7 = vmov 0.0   ;;  %vm71_vm0 = vcmask 261120   ;;  %v727_v36 = vmov 0.0|0.0   ;;  %vm728_vm1 = vmmov 0   ;;  %s1044_s0 = inlined_call_operand.vmem [shape: f32[8,32], index: 0, kind: input, shape index: {}]   ;;  %s1045_s1 = inlined_call_operand.vmem [shape: f32[32,640], index: 1, kind: input, shape index: {}]   ;;  %s1046_s2 = inlined_call_operand.vmem [shape: f32[1,640], index: 2, kind: input, shape index: {}]   ;;  %s1047_s3 = inlined_call_operand.vmem [shape: f32[512,128], index: 3, kind: input, shape index: {}]   ;;  %s1048_s4 = inlined_call_operand.vmem [shape: f32[1,128], index: 4, kind: input, shape index: {}]   ;;  %s1049_s5 = inlined_call_operand.hbm [shape: f32[8,128], index: 5, kind: output, shape index: {0}]   ;;  %s1050_s6 = inlined_call_operand.vmem [shape: f32[8,128], index: 6, kind: output, shape index: {1}]  }
   0x1   :  { %v25_v0 = vld [vmem:[%s1045_s1 + $0x8] sm:$0xff]  ;;  %v30_v1 = vld [vmem:[%s1045_s1 + $0x30] sm:$0xff]  ;;  %v27_v2 = vld [vmem:[%s1045_s1 + $0x18] sm:$0xff]  ;;  %139 = vmatprep.mubr.f32.mxu0 %v726_v7  ;;  %210 = vmatprep.mubr.f32.mxu1 %v726_v7 }
   0x2   :  { %v612_v3 = vpack.c.bf16 %v30_v1, %v25_v0  ;;  %v32_v4 = vld [vmem:[%s1045_s1 + $0x40] sm:$0xff]  ;;  %v29_v6 = vld [vmem:[%s1045_s1 + $0x28] sm:$0xff]  ;;  %v26_v10 = vld [vmem:[%s1045_s1 + $0x10] sm:$0xff] }
   0x3   :  { %v24_v5 = vld [vmem:[%s1045_s1] sm:$0xff]  ;;  %v620_v8 = vpack.c.bf16 %v32_v4, %v27_v2  ;;  %v31_v11 = vld [vmem:[%s1045_s1 + $0x38] sm:$0xff]  ;;  %v37_v15 = vld [vmem:[%s1045_s1 + $0x68] sm:$0xff] }
   0x4   :  { %v614_v9 = vpack.c.bf16 %v29_v6, %v24_v5  ;;  %v35_v12 = vld [vmem:[%s1045_s1 + $0x58] sm:$0xff]  ;;  %613 = vmatprep.subr.bf16.mxu0 %v612_v3  ;;  %v622_v13 = vpack.c.bf16 %v31_v11, %v26_v10  ;;  %v40_v14 = vld [vmem:[%s1045_s1 + $0x80] sm:$0xff]  ;;  %v42_v16 = vld [vmem:[%s1045_s1 + $0x90] sm:$0xff] }
   0x5   :  { %621 = vmatprep.subr.bf16.mxu1 %v620_v8  ;;  %v616_v17 = vpack.c.bf16 %v40_v14, %v35_v12  ;;  %v624_v18 = vpack.c.bf16 %v42_v16, %v37_v15  ;;  %v34_v19 = vld [vmem:[%s1045_s1 + $0x50] sm:$0xff]  ;;  %v39_v20 = vld [vmem:[%s1045_s1 + $0x78] sm:$0xff]  ;;  %v36_v21 = vld [vmem:[%s1045_s1 + $0x60] sm:$0xff] }
   0x6   :  { %615 = vmatpush1.bf16.msra.mxu0 %v614_v9  ;;  %623 = vmatpush1.bf16.msra.mxu1 %v622_v13  ;;  %v618_v22 = vpack.c.bf16 %v39_v20, %v34_v19  ;;  %v41_v23 = vld [vmem:[%s1045_s1 + $0x88] sm:$0xff]  ;;  %v28_v24 = vld [vmem:[%s1045_s1 + $0x20] sm:$0xff]  ;;  %v310_v34 = vld [vmem:[%s1047_s3 + $0x90] sm:$0xff] }
   0x7   :  { %617 = vmatprep.subr.bf16.mxu0 %v616_v17  ;;  %625 = vmatprep.subr.bf16.mxu1 %v624_v18  ;;  %v626_v25 = vpack.c.bf16 %v41_v23, %v36_v21  ;;  %v23_v26 = vld [vmem:[%s1044_s0] sm:$0xff]  ;;  %v33_v27 = vld [vmem:[%s1045_s1 + $0x48] sm:$0xff]  ;;  %v311_v35 = vld [vmem:[%s1047_s3 + $0x98] sm:$0xff] }
   0x8   :  { %v308_v28 = vld [vmem:[%s1047_s3 + $0x80] sm:$0xff]  ;;  %v309_v29 = vld [vmem:[%s1047_s3 + $0x88] sm:$0xff]  ;;  %v629_v31 = vpack.c.bf16 %v33_v27, %v28_v24  ;;  %v38_v37 = vld [vmem:[%s1045_s1 + $0x70] sm:$0xff]  ;;  %v638_v42 = vpack.c.bf16 %v311_v35, %v310_v34 }
   0x9   :  { %v292_v30 = vld [vmem:[%s1047_s3] sm:$0xff]  ;;  %v634_v32 = vpack.c.bf16 %v309_v29, %v308_v28  ;;  %v293_v33 = vld [vmem:[%s1047_s3 + $0x8] sm:$0xff]  ;;  %v43_v38 = vld [vmem:[%s1045_s1 + $0x98] sm:$0xff] }
   0xa   :  { %619 = vmatpush1.bf16.msra.mxu0 %v618_v22  ;;  %627 = vmatpush1.bf16.msra.mxu1 %v626_v25  ;;  %v636_v39 = vpack.c.bf16 %v293_v33, %v292_v30  ;;  %v340_v40 = vld [vmem:[%s1047_s3 + $0x180] sm:$0xff]  ;;  %v341_v41 = vld [vmem:[%s1047_s3 + $0x188] sm:$0xff]  ;;  %v294_v43 = vld [vmem:[%s1047_s3 + $0x10] sm:$0xff]  ;;  %v632_v45 = vpack.c.bf16 %v43_v38, %v38_v37 }
   0xb   :  { %628 = vmatprep.subr.bf16.mxu0 %v727_v36  ;;  %635 = vmatprep.subr.bf16.mxu1 %v634_v32  ;;  %v295_v44 = vld [vmem:[%s1047_s3 + $0x18] sm:$0xff]  ;;  %v312_v46 = vld [vmem:[%s1047_s3 + $0xa0] sm:$0xff]  ;;  %v313_v47 = vld [vmem:[%s1047_s3 + $0xa8] sm:$0xff]  ;;  %v666_v48 = vpack.c.bf16 %v341_v41, %v340_v40 }
   0xc   :  { %v324_v49 = vld [vmem:[%s1047_s3 + $0x100] sm:$0xff]  ;;  %v325_v50 = vld [vmem:[%s1047_s3 + $0x108] sm:$0xff]  ;;  %v640_v51 = vpack.c.bf16 %v295_v44, %v294_v43  ;;  %v342_v52 = vld [vmem:[%s1047_s3 + $0x190] sm:$0xff]  ;;  %v642_v54 = vpack.c.bf16 %v313_v47, %v312_v46 }
   0xd   :  { %522 = vmatmul.mubr.msk.f32.vlgmr.msra.gmra.mrb[0].mxu0 %vm71_vm0, %v23_v26  ;;  %523 = vmatmul.mubr.msk.f32.vlgmr.msra.gmra.mrb[0].mxu1 %vm71_vm0, %v23_v26  ;;  %v343_v53 = vld [vmem:[%s1047_s3 + $0x198] sm:$0xff]  ;;  %v296_v55 = vld [vmem:[%s1047_s3 + $0x20] sm:$0xff]  ;;  %v297_v56 = vld [vmem:[%s1047_s3 + $0x28] sm:$0xff]  ;;  %v668_v57 = vpack.c.bf16 %v325_v50, %v324_v49 }
   0xe   :  { %630 = vmatpush3.bf16.msra.mxu0 %v629_v31  ;;  %609 = vmatprep.mubr.msk.f32.mxu0 %vm728_vm1, %v726_v7  ;;  %v314_v58 = vld [vmem:[%s1047_s3 + $0xb0] sm:$0xff]  ;;  %v315_v59 = vld [vmem:[%s1047_s3 + $0xb8] sm:$0xff]  ;;  %v670_v60 = vpack.c.bf16 %v343_v53, %v342_v52  ;;  %v644_v63 = vpack.c.bf16 %v297_v56, %v296_v55  ;;  %v344_v0 = vld [vmem:[%s1047_s3 + $0x1a0] sm:$0xff] }
   0xf   :  { %631 = vmatprep.subr.bf16.mxu0 %v727_v36  ;;  %637 = vmatpush3.bf16.msra.mxu1 %v636_v39  ;;  %v326_v61 = vld [vmem:[%s1047_s3 + $0x110] sm:$0xff]  ;;  %v327_v62 = vld [vmem:[%s1047_s3 + $0x118] sm:$0xff]  ;;  %v345_v1 = vld [vmem:[%s1047_s3 + $0x1a8] sm:$0xff]  ;;  %v646_v2 = vpack.c.bf16 %v315_v59, %v314_v58 }
  0x10   :  { %639 = vmatprep.subr.bf16.mxu1 %v638_v42  ;;  %v298_v3 = vld [vmem:[%s1047_s3 + $0x30] sm:$0xff]  ;;  %v299_v4 = vld [vmem:[%s1047_s3 + $0x38] sm:$0xff]  ;;  %v672_v5 = vpack.c.bf16 %v327_v62, %v326_v61  ;;  %v316_v6 = vld [vmem:[%s1047_s3 + $0xc0] sm:$0xff]  ;;  %v674_v8 = vpack.c.bf16 %v345_v1, %v344_v0 }
  0x11   :  { %v317_v7 = vld [vmem:[%s1047_s3 + $0xc8] sm:$0xff]  ;;  %v328_v9 = vld [vmem:[%s1047_s3 + $0x120] sm:$0xff]  ;;  %v648_v11 = vpack.c.bf16 %v299_v4, %v298_v3  ;;  %v346_v12 = vld [vmem:[%s1047_s3 + $0x1b0] sm:$0xff] }
  0x12   :  { %633 = vmatpush3.bf16.msra.mxu0 %v632_v45  ;;  %v329_v10 = vld [vmem:[%s1047_s3 + $0x128] sm:$0xff]  ;;  %v347_v13 = vld [vmem:[%s1047_s3 + $0x1b8] sm:$0xff]  ;;  %v650_v14 = vpack.c.bf16 %v317_v7, %v316_v6  ;;  %v300_v15 = vld [vmem:[%s1047_s3 + $0x40] sm:$0xff] }
  0x13   :  { %667 = vmatprep.subr.bf16.mxu0 %v666_v48  ;;  %641 = vmatpush3.bf16.msra.mxu1 %v640_v51  ;;  %v301_v16 = vld [vmem:[%s1047_s3 + $0x48] sm:$0xff] }
  0x14   :  { %643 = vmatprep.subr.bf16.mxu1 %v642_v54 }
  0x15   :  { %610 = vmatmul.mubr.msk.f32.vlgmr.msra.gmra.mrb[2].mxu0 %vm71_vm0, %v23_v26 }
  0x16   :  { %669 = vmatpush3.bf16.msra.mxu0 %v668_v57 }
  0x17   :  { %671 = vmatprep.subr.bf16.mxu0 %v670_v60  ;;  %645 = vmatpush3.bf16.msra.mxu1 %v644_v63 }
  0x18   :  { %647 = vmatprep.subr.bf16.mxu1 %v646_v2 }
  0x19   :  { %12 = vsyncpa [#allocation3], 0  ;;  %v676_v17 = vpack.c.bf16 %v329_v10, %v328_v9  ;;  %v318_v18 = vld [vmem:[%s1047_s3 + $0xd0] sm:$0xff]  ;;  %v319_v19 = vld [vmem:[%s1047_s3 + $0xd8] sm:$0xff]  ;;  %v678_v20 = vpack.c.bf16 %v347_v13, %v346_v12  ;;  %v652_v23 = vpack.c.bf16 %v301_v16, %v300_v15  ;;  %v46_v1 = vlaneseq }
  0x1a   :  { %673 = vmatpush3.bf16.msra.mxu0 %v672_v5  ;;  %v330_v21 = vld [vmem:[%s1047_s3 + $0x130] sm:$0xff]  ;;  %v331_v22 = vld [vmem:[%s1047_s3 + $0x138] sm:$0xff]  ;;  %v348_v24 = vld [vmem:[%s1047_s3 + $0x1c0] sm:$0xff]  ;;  %v654_v26 = vpack.c.bf16 %v319_v19, %v318_v18 }
  0x1b   :  { %675 = vmatprep.subr.bf16.mxu0 %v674_v8  ;;  %649 = vmatpush3.bf16.msra.mxu1 %v648_v11  ;;  %v349_v25 = vld [vmem:[%s1047_s3 + $0x1c8] sm:$0xff]  ;;  %v302_v27 = vld [vmem:[%s1047_s3 + $0x50] sm:$0xff]  ;;  %v303_v28 = vld [vmem:[%s1047_s3 + $0x58] sm:$0xff]  ;;  %v680_v29 = vpack.c.bf16 %v331_v22, %v330_v21  ;;  %v47_v2 = vshrl.u32 %v46_v1, 7 }
  0x1c   :  { %651 = vmatprep.subr.bf16.mxu1 %v650_v14  ;;  %v320_v30 = vld [vmem:[%s1047_s3 + $0xe0] sm:$0xff]  ;;  %v321_v31 = vld [vmem:[%s1047_s3 + $0xe8] sm:$0xff]  ;;  %v682_v32 = vpack.c.bf16 %v349_v25, %v348_v24  ;;  %v656_v35 = vpack.c.bf16 %v303_v28, %v302_v27  ;;  %v322_v41 = vld [vmem:[%s1047_s3 + $0xf0] sm:$0xff] }
  0x1d   :  { %v332_v33 = vld [vmem:[%s1047_s3 + $0x140] sm:$0xff]  ;;  %v333_v34 = vld [vmem:[%s1047_s3 + $0x148] sm:$0xff]  ;;  %v658_v36 = vpack.c.bf16 %v321_v31, %v320_v30  ;;  %v323_v42 = vld [vmem:[%s1047_s3 + $0xf8] sm:$0xff]  ;;  %v48_v3 = vsub.s32 0, %v47_v2  ;;  %v56_v5 = vsub.s32 2, %v47_v2  ;;  %v52_v6 = vsub.s32 1, %v47_v2 }
  0x1e   :  { %677 = vmatpush3.bf16.msra.mxu0 %v676_v17  ;;  %v304_v37 = vld [vmem:[%s1047_s3 + $0x60] sm:$0xff]  ;;  %v305_v38 = vld [vmem:[%s1047_s3 + $0x68] sm:$0xff]  ;;  %v684_v39 = vpack.c.bf16 %v333_v34, %v332_v33  ;;  %v350_v43 = vld [vmem:[%s1047_s3 + $0x1d0] sm:$0xff]  ;;  %v662_v44 = vpack.c.bf16 %v323_v42, %v322_v41  ;;  %v60_v11 = vsub.s32 3, %v47_v2  ;;  %v64_v15 = vsub.s32 4, %v47_v2 }
  0x1f   :  { %679 = vmatprep.subr.bf16.mxu0 %v678_v20  ;;  %653 = vmatpush3.bf16.msra.mxu1 %v652_v23  ;;  %v660_v40 = vpack.c.bf16 %v305_v38, %v304_v37  ;;  %v351_v45 = vld [vmem:[%s1047_s3 + $0x1d8] sm:$0xff]  ;;  %v306_v46 = vld [vmem:[%s1047_s3 + $0x70] sm:$0xff]  ;;  %v352_v53 = vld [vmem:[%s1047_s3 + $0x1e0] sm:$0xff] }
  0x20   :  { %655 = vmatprep.subr.bf16.mxu1 %v654_v26  ;;  %v307_v47 = vld [vmem:[%s1047_s3 + $0x78] sm:$0xff]  ;;  %v686_v48 = vpack.c.bf16 %v351_v45, %v350_v43  ;;  %v334_v50 = vld [vmem:[%s1047_s3 + $0x150] sm:$0xff]  ;;  %v353_v54 = vld [vmem:[%s1047_s3 + $0x1e8] sm:$0xff] }
  0x21   :  { %v664_v49 = vpack.c.bf16 %v307_v47, %v306_v46  ;;  %v335_v51 = vld [vmem:[%s1047_s3 + $0x158] sm:$0xff]  ;;  %v690_v55 = vpack.c.bf16 %v353_v54, %v352_v53  ;;  %v336_v56 = vld [vmem:[%s1047_s3 + $0x160] sm:$0xff]  ;;  %v337_v57 = vld [vmem:[%s1047_s3 + $0x168] sm:$0xff] }
  0x22   :  { %681 = vmatpush3.bf16.msra.mxu0 %v680_v29  ;;  %v688_v52 = vpack.c.bf16 %v335_v51, %v334_v50  ;;  %v692_v58 = vpack.c.bf16 %v337_v57, %v336_v56  ;;  %v354_v59 = vld [vmem:[%s1047_s3 + $0x1f0] sm:$0xff]  ;;  %v355_v60 = vld [vmem:[%s1047_s3 + $0x1f8] sm:$0xff]  ;;  %v44_v4 = vld [vmem:[%s1046_s2] sm:$0x1f]  ;;  %s729_s2 = smov [#allocation2]  }
  0x23   :  { %683 = vmatprep.subr.bf16.mxu0 %v682_v32  ;;  %657 = vmatpush3.bf16.msra.mxu1 %v656_v35  ;;  %v694_v61 = vpack.c.bf16 %v355_v60, %v354_v59  ;;  %v338_v62 = vld [vmem:[%s1047_s3 + $0x170] sm:$0xff]  ;;  %v339_v63 = vld [vmem:[%s1047_s3 + $0x178] sm:$0xff]  ;;  %v49_v7 = vrot.slane %v44_v4, %v48_v3  ;;  %v57_v8 = vrot.slane %v44_v4, %v56_v5  ;;  %s510_s3 = sshll.u32 %s729_s2, 4  ;;  %s511_s3 = int_to_ptr.vmem [resolvable:$true] %s510_s3 }
  0x24   :  { %659 = vmatprep.subr.bf16.mxu1 %v658_v36  ;;  %v696_v0 = vpack.c.bf16 %v339_v63, %v338_v62  ;;  %v53_v9 = vrot.slane %v44_v4, %v52_v6  ;;  %v61_v21 = vrot.slane %v44_v4, %v60_v11  ;;  %v65_v22 = vrot.slane %v44_v4, %v64_v15  ;;  %s702_s15 = scalar_lea.vmem %s511_s3, 128  ;;  %p707_p1 = scmp.lt.s32.totalorder %s511_s3, %s511_s3 }
  0x25   :  { %p703_p0 = scmp.ne.s32.totalorder %s511_s3, %s702_s15  ;;  %p708_p2 = scmp.lt.s32.totalorder %s702_s15, %s702_s15 }
  0x26   :  { %685 = vmatpush3.bf16.msra.mxu0 %v684_v39 }
  0x27   :  { %661 = vmatpush3.bf16.msra.mxu1 %v660_v40  ;;  %687 = vmatprep.subr.bf16.mxu0 %v686_v48  ;;  %p709_p3 = por %p708_p2, %p707_p1 }
  0x28   :  { %663 = vmatprep.subr.bf16.mxu1 %v662_v44 }
  0x29   :  { %p710_p4 = pnand %p709_p3, %p703_p0 }
  0x2a   :  { %689 = vmatpush3.bf16.msra.mxu0 %v688_v52 }
  0x2b   :  { %665 = vmatpush3.bf16.msra.mxu1 %v664_v49  ;;  %691 = vmatprep.subr.bf16.mxu0 %v690_v55 }
  0x2e   :  { %693 = vmatpush3.bf16.msra.mxu0 %v692_v58 }
  0x2f   :  { %695 = vmatprep.subr.bf16.mxu0 %v694_v61 }
  0x32   :  { %697 = vmatpush3.bf16.msra.mxu0 %v696_v0 }
  0xe0   :  { %v141_v10 = vpop.f32.mrb[0].mxu0  ;;  %v212_v13 = vpop.f32.mrb[0].mxu1 }
  0xe1   :  { %v142_v12 = vadd.f32 %v141_v10, %v49_v7  ;;  %v143_v14 = vpop.f32.mrb[1].mxu0  ;;  %v213_v16 = vadd.f32 %v212_v13, %v57_v8  ;;  %v214_v18 = vpop.f32.mrb[1].mxu1 }
  0xe2   :  { %v144_v17 = vadd.f32 %v143_v14, %v53_v9  ;;  %v215_v23 = vadd.f32 %v214_v18, %v61_v21 }
  0xe3   :  { %287 = vst [vmem:[#allocation2] sm:$0xff] %v142_v12  ;;  %v289_v19 = vmax.f32 %v213_v16, 0.0 }
  0xe4   :  { %v288_v20 = vmax.f32 %v144_v17, 0.0  ;;  %v290_v28 = vmax.f32 %v215_v23, 0.0 }
  0xe5   :  { %427 = vmatprep.mubr.f32.mxu1 %v289_v19 }
  0xe6   :  { %428 = vmatmul.mubr.f32.vlgmr.msra.gmra.mrb[2].mxu1 %v288_v20 }
  0xe8   :  { %v283_v24 = vpop.f32.mrb[2].mxu0 }
  0xe9   :  { %v284_v25 = vadd.f32 %v283_v24, %v65_v22  ;;  %v611_v26 = vpop.f32.mrb[3].mxu0 }
  0xeb   :  { %v291_v27 = vmax.f32 %v284_v25, 0.0 }
  0xed   :  { %497 = vmatprep.mubr.f32.mxu0 %v291_v27 }
  0xee   :  { %498 = vmatmul.mubr.f32.vlgmr.msra.gmra.mrb[4].mxu0 %v290_v28 }
  0xef   :  { %713 = shalt.err (!%p710_p4)
}
  0xf0   :  { %s714_s17 = scalar_lea.hbm %s1049_s5, 128 }
  0xf1   :  { %p715_p5 = scmp.ne.s32.totalorder %s1049_s5, %s714_s17  ;;  %p718_p6 = scmp.lt.u32.totalorder %s714_s17, %s1049_s5 }
  0xf3   :  { %p720_p7 = pnand %p718_p6, %p715_p5 }
  0xf5   :  { %723 = shalt.err (!%p720_p7)
}
  0xf6   :  { %513 = dma.vmem_to_hbm [thread:$0]  %s511_s3, 128, %s1049_s5, [#allocation3]   ;;  %v525_v32 = vld [vmem:[%s1048_s4] ss:$0 sm:$0xff] }
 0x1b9   :  { %v563_v29 = vpop.f32.mrb[2].mxu1 }
 0x1ba   :  { %v564_v30 = vpop.f32.mrb[3].mxu1 }
 0x1bb   :  { %v565_v31 = vadd.f32 %v564_v30, %v563_v29 }
 0x1bd   :  { %v430_v35 = vadd.f32 %v565_v31, %v525_v32 }
 0x1c1   :  { %v598_v33 = vpop.f32.mrb[4].mxu0 }
 0x1c2   :  { %v599_v34 = vpop.f32.mrb[5].mxu0 }
 0x1c3   :  { %v600_v36 = vadd.f32 %v599_v34, %v598_v33 }
 0x1c5   :  { %v500_v37 = vadd.f32 %v600_v36, %v430_v35 }
 0x1c7   :  { %503 = vst [vmem:[%s1050_s6] sm:$0xff] %v500_v37 }
 0x1c8   :  { %724 = dma.done.wait [#allocation3], 128  }
 0x1c9   :  { %725 = vsyncadd [#allocation3], 4294967168 }
 0x1ca   :  { %521 = vsyncpa [#allocation3], 1 }

</bundles_post_ra>
